<compile_context>
chip_gen: v5e
topology: v5e:2x2
jax: 0.10.0
libtpu: 0.0.40
codegen_flags: <defaults>
</compile_context>

<pallas_src>
import jax
import jax.numpy as jnp
from jax import lax
from jax.experimental import pallas as pl
from jax.experimental.pallas import tpu as pltpu


def _spatial_attention_kernel(x_ref, w_ref, o_ref):
    # x_ref: (nb, C, L) VMEM block (native dtype)
    # w_ref: (2*K,) f32 in SMEM  [avg-channel taps (K), max-channel taps (K)]
    # o_ref: (nb, C, L) VMEM block
    nb, C, L = x_ref.shape
    K = w_ref.shape[0] // 2
    pad = K // 2

    x = x_ref[...]

    # Channel pooling (sublane reduce).  f32 accumulation for the mean without
    # materializing a full f32 copy of the tile; max stays in the native dtype
    # and only the small (nb, L) result is widened.
    avg = jnp.sum(x, axis=1, dtype=jnp.float32) * (1.0 / C)    # (nb, L) f32
    mx = jnp.max(x, axis=1).astype(jnp.float32)                # (nb, L) f32

    # Hoist the scalar conv taps (SMEM loads) out of the MAC loop.
    wa = [w_ref[k] for k in range(K)]
    wm = [w_ref[K + k] for k in range(K)]

    # "Same" convolution with zero padding, done on the tiny pooled maps:
    # pad by K//2 zeros on each side, then accumulate K statically shifted
    # windows (cross-correlation, matching torch Conv1d).
    zpad = jnp.zeros((nb, pad), jnp.float32)
    avg_p = jnp.concatenate([zpad, avg, zpad], axis=1)         # (nb, L + 2*pad)
    mx_p = jnp.concatenate([zpad, mx, zpad], axis=1)

    acc = jnp.zeros((nb, L), jnp.float32)
    for k in range(K):                                         # K unrolled taps
        acc = acc + wa[k] * avg_p[:, k:k + L] + wm[k] * mx_p[:, k:k + L]

    attn = jax.nn.sigmoid(acc)                                 # (nb, L) gate

    # Gate multiply + store in the input dtype (keeps the dominant HBM stream
    # at the I/O dtype).
    o_ref[...] = (x * attn[:, None, :].astype(x.dtype)).astype(o_ref.dtype)


def _vmem_capacity_bytes():
    try:
        return int(pltpu.get_tpu_info().vmem_capacity_bytes)
    except Exception:
        return 128 * 1024 * 1024  # v5e/v6e default; v7x reports 64 MiB


def spatial_attention(x, w, *, vmem_limit_bytes=None, vmem_block_budget_bytes=None):
    """x: (N, C, L); w: (1, 2, K) Conv1d weight (odd K, no bias)."""
    N, C, L = x.shape
    K = w.shape[-1]
    assert K % 2 == 1, "SpatialAttention 'same' conv requires an odd kernel size"

    w_flat = w.reshape(-1).astype(jnp.float32)                 # (2*K,) -> SMEM

    # Generation-aware VMEM budget: ~3/4 of physical (v5e/v6e 128 MiB -> 96,
    # v7x 64 MiB -> 48); half of that feeds the block-sizing calculation.
    cap = _vmem_capacity_bytes()
    if vmem_limit_bytes is None:
        vmem_limit_bytes = min(cap * 3 // 4, 96 * 1024 * 1024)
    if vmem_block_budget_bytes is None:
        vmem_block_budget_bytes = vmem_limit_bytes // 2

    # Per-batch-row VMEM footprint:
    #   * C rounded up to the sublane tile (8/16/32 for 4/2/1-byte dtypes),
    #     L rounded up to the 128-lane tile (blocks are tile-padded in VMEM);
    #   * x-in + out blocks, each double-buffered by the pipeline (factor 4);
    #   * f32 intermediates (avg/mx/padded copies/acc/attn) ~ 8 lane-rows.
    itemsize = jnp.dtype(x.dtype).itemsize
    sublane = {4: 8, 2: 16, 1: 32}.get(itemsize, 8)
    c_pad = pl.cdiv(C, sublane) * sublane
    l_pad = pl.cdiv(L, 128) * 128
    per_row = 4 * c_pad * l_pad * itemsize + 8 * (l_pad + 256) * 4

    nb = int(max(1, min(N, vmem_block_budget_bytes // per_row)))
    # Keep >= 2 grid steps whenever N >= 2 so both v7x TensorCores get work
    # (harmless on single-TC v5e/v6e: per-step overhead is ~0.35 us).
    nb = int(min(nb, max(1, pl.cdiv(N, 2))))
    grid = (pl.cdiv(N, nb),)

    # Make sure the limit covers at least one row-block (+ margin), capped at
    # physical VMEM.
    # TODO(synk): add an inner L-tiling path (with a K//2 halo) for shapes
    # where even a single (1, C, L) block exceeds VMEM capacity.
    vmem_limit_bytes = int(min(max(vmem_limit_bytes, nb * per_row + (2 << 20)), cap))

    return pl.pallas_call(
        _spatial_attention_kernel,
        out_shape=jax.ShapeDtypeStruct((N, C, L), x.dtype),
        grid=grid,
        in_specs=[
            pl.BlockSpec((nb, C, L), lambda b: (b, 0, 0)),          # x tile
            pl.BlockSpec(memory_space=pltpu.MemorySpace.SMEM),      # conv taps
        ],
        out_specs=pl.BlockSpec((nb, C, L), lambda b: (b, 0, 0)),
        compiler_params=pltpu.CompilerParams(
            dimension_semantics=("parallel",),
            vmem_limit_bytes=vmem_limit_bytes,
        ),
    )(x, w_flat)


def spatial_attention_ref(x, w):
    """Pure-JAX reference matching the PyTorch module."""
    avg = jnp.mean(x, axis=1, keepdims=True)
    mx = jnp.max(x, axis=1, keepdims=True)
    cat = jnp.concatenate([avg, mx], axis=1)                    # (N, 2, L)
    K = w.shape[-1]
    conv = lax.conv_general_dilated(
        cat, w, window_strides=(1,), padding=[(K // 2, K // 2)],
        dimension_numbers=("NCH", "OIH", "NCH"))                # (N, 1, L)
    return jax.nn.sigmoid(conv) * x


if __name__ == "__main__":
    N, C, L, K = 2, 4, 16, 7

    key = jax.random.PRNGKey(0)
    kx, kw = jax.random.split(key)
    x = jax.random.normal(kx, (N, C, L), dtype=jnp.float32)
    # deterministic synthetic Conv1d weight, shape (out=1, in=2, K)
    w = 0.1 * jax.random.normal(kw, (1, 2, K), dtype=jnp.float32)

    out = spatial_attention(x, w)
    out = jax.block_until_ready(out)

    ref = spatial_attention_ref(x, w)
    assert out.shape == (N, C, L)
    assert jnp.allclose(out, ref, atol=1e-5, rtol=1e-5), "mismatch vs reference"

    print("KERNEL_OK")
</pallas_src>

<mosaic_0001>
module attributes {stable_mosaic.version = 11 : i64} {
  func.func @_spatial_attention_kernel(%arg0: i32, %arg1: memref<1x4x16xf32, #tpu.memory_space<vmem>>, %arg2: memref<14xf32, #tpu.memory_space<smem>>, %arg3: memref<1x4x16xf32, #tpu.memory_space<vmem>>) attributes {dimension_semantics = [#tpu.dimension_semantics<parallel>], iteration_bounds = array<i64: 2>, scalar_prefetch = 0 : i64, scratch_operands = 0 : i64, tpu.core_type = #tpu.core_type<tc>, window_params = [{transform_indices = @transform_0, window_bounds = array<i64: 1, 4, 16>}, {transform_indices = @transform_1, window_bounds = array<i64: 14>}, {transform_indices = @transform_2, window_bounds = array<i64: 1, 4, 16>}]} {
    %c0 = arith.constant 0 : index
    %c0_0 = arith.constant 0 : index
    %c0_1 = arith.constant 0 : index
    %0 = vector.load %arg1[%c0, %c0_0, %c0_1] : memref<1x4x16xf32, #tpu.memory_space<vmem>>, vector<1x4x16xf32>
    %cst = arith.constant dense<0.000000e+00> : vector<1x16xf32>
    %1 = vector.multi_reduction <add>, %0, %cst [1] : vector<1x4x16xf32> to vector<1x16xf32>
    %cst_2 = arith.constant 2.500000e-01 : f32
    %2 = vector.broadcast %cst_2 : f32 to vector<1x16xf32>
    %3 = arith.mulf %1, %2 : vector<1x16xf32>
    %cst_3 = arith.constant dense<0xFF800000> : vector<1x16xf32>
    %4 = vector.multi_reduction <maximumf>, %0, %cst_3 [1] : vector<1x4x16xf32> to vector<1x16xf32>
    %c0_4 = arith.constant 0 : index
    %5 = memref.load %arg2[%c0_4] : memref<14xf32, #tpu.memory_space<smem>>
    %c1 = arith.constant 1 : index
    %6 = memref.load %arg2[%c1] : memref<14xf32, #tpu.memory_space<smem>>
    %c2 = arith.constant 2 : index
    %7 = memref.load %arg2[%c2] : memref<14xf32, #tpu.memory_space<smem>>
    %c3 = arith.constant 3 : index
    %8 = memref.load %arg2[%c3] : memref<14xf32, #tpu.memory_space<smem>>
    %c4 = arith.constant 4 : index
    %9 = memref.load %arg2[%c4] : memref<14xf32, #tpu.memory_space<smem>>
    %c5 = arith.constant 5 : index
    %10 = memref.load %arg2[%c5] : memref<14xf32, #tpu.memory_space<smem>>
    %c6 = arith.constant 6 : index
    %11 = memref.load %arg2[%c6] : memref<14xf32, #tpu.memory_space<smem>>
    %c7 = arith.constant 7 : index
    %12 = memref.load %arg2[%c7] : memref<14xf32, #tpu.memory_space<smem>>
    %c8 = arith.constant 8 : index
    %13 = memref.load %arg2[%c8] : memref<14xf32, #tpu.memory_space<smem>>
    %c9 = arith.constant 9 : index
    %14 = memref.load %arg2[%c9] : memref<14xf32, #tpu.memory_space<smem>>
    %c10 = arith.constant 10 : index
    %15 = memref.load %arg2[%c10] : memref<14xf32, #tpu.memory_space<smem>>
    %c11 = arith.constant 11 : index
    %16 = memref.load %arg2[%c11] : memref<14xf32, #tpu.memory_space<smem>>
    %c12 = arith.constant 12 : index
    %17 = memref.load %arg2[%c12] : memref<14xf32, #tpu.memory_space<smem>>
    %c13 = arith.constant 13 : index
    %18 = memref.load %arg2[%c13] : memref<14xf32, #tpu.memory_space<smem>>
    %cst_5 = arith.constant 0.000000e+00 : f32
    %19 = vector.broadcast %cst_5 : f32 to vector<1x3xf32>
    %20 = tpu.concatenate %19, %3, %19 in 1 : vector<1x3xf32>, vector<1x16xf32>, vector<1x3xf32> -> vector<1x22xf32>
    %21 = tpu.concatenate %19, %4, %19 in 1 : vector<1x3xf32>, vector<1x16xf32>, vector<1x3xf32> -> vector<1x22xf32>
    %cst_6 = arith.constant 0.000000e+00 : f32
    %22 = vector.broadcast %cst_6 : f32 to vector<1x16xf32>
    %23 = vector.extract_strided_slice %20 {offsets = [0, 0], sizes = [1, 16], strides = [1, 1]} : vector<1x22xf32> to vector<1x16xf32>
    %24 = vector.broadcast %5 : f32 to vector<1x16xf32>
    %25 = arith.mulf %24, %23 : vector<1x16xf32>
    %26 = arith.addf %22, %25 : vector<1x16xf32>
    %27 = vector.extract_strided_slice %21 {offsets = [0, 0], sizes = [1, 16], strides = [1, 1]} : vector<1x22xf32> to vector<1x16xf32>
    %28 = vector.broadcast %12 : f32 to vector<1x16xf32>
    %29 = arith.mulf %28, %27 : vector<1x16xf32>
    %30 = arith.addf %26, %29 : vector<1x16xf32>
    %31 = vector.extract_strided_slice %20 {offsets = [0, 1], sizes = [1, 16], strides = [1, 1]} : vector<1x22xf32> to vector<1x16xf32>
    %32 = vector.broadcast %6 : f32 to vector<1x16xf32>
    %33 = arith.mulf %32, %31 : vector<1x16xf32>
    %34 = arith.addf %30, %33 : vector<1x16xf32>
    %35 = vector.extract_strided_slice %21 {offsets = [0, 1], sizes = [1, 16], strides = [1, 1]} : vector<1x22xf32> to vector<1x16xf32>
    %36 = vector.broadcast %13 : f32 to vector<1x16xf32>
    %37 = arith.mulf %36, %35 : vector<1x16xf32>
    %38 = arith.addf %34, %37 : vector<1x16xf32>
    %39 = vector.extract_strided_slice %20 {offsets = [0, 2], sizes = [1, 16], strides = [1, 1]} : vector<1x22xf32> to vector<1x16xf32>
    %40 = vector.broadcast %7 : f32 to vector<1x16xf32>
    %41 = arith.mulf %40, %39 : vector<1x16xf32>
    %42 = arith.addf %38, %41 : vector<1x16xf32>
    %43 = vector.extract_strided_slice %21 {offsets = [0, 2], sizes = [1, 16], strides = [1, 1]} : vector<1x22xf32> to vector<1x16xf32>
    %44 = vector.broadcast %14 : f32 to vector<1x16xf32>
    %45 = arith.mulf %44, %43 : vector<1x16xf32>
    %46 = arith.addf %42, %45 : vector<1x16xf32>
    %47 = vector.extract_strided_slice %20 {offsets = [0, 3], sizes = [1, 16], strides = [1, 1]} : vector<1x22xf32> to vector<1x16xf32>
    %48 = vector.broadcast %8 : f32 to vector<1x16xf32>
    %49 = arith.mulf %48, %47 : vector<1x16xf32>
    %50 = arith.addf %46, %49 : vector<1x16xf32>
    %51 = vector.extract_strided_slice %21 {offsets = [0, 3], sizes = [1, 16], strides = [1, 1]} : vector<1x22xf32> to vector<1x16xf32>
    %52 = vector.broadcast %15 : f32 to vector<1x16xf32>
    %53 = arith.mulf %52, %51 : vector<1x16xf32>
    %54 = arith.addf %50, %53 : vector<1x16xf32>
    %55 = vector.extract_strided_slice %20 {offsets = [0, 4], sizes = [1, 16], strides = [1, 1]} : vector<1x22xf32> to vector<1x16xf32>
    %56 = vector.broadcast %9 : f32 to vector<1x16xf32>
    %57 = arith.mulf %56, %55 : vector<1x16xf32>
    %58 = arith.addf %54, %57 : vector<1x16xf32>
    %59 = vector.extract_strided_slice %21 {offsets = [0, 4], sizes = [1, 16], strides = [1, 1]} : vector<1x22xf32> to vector<1x16xf32>
    %60 = vector.broadcast %16 : f32 to vector<1x16xf32>
    %61 = arith.mulf %60, %59 : vector<1x16xf32>
    %62 = arith.addf %58, %61 : vector<1x16xf32>
    %63 = vector.extract_strided_slice %20 {offsets = [0, 5], sizes = [1, 16], strides = [1, 1]} : vector<1x22xf32> to vector<1x16xf32>
    %64 = vector.broadcast %10 : f32 to vector<1x16xf32>
    %65 = arith.mulf %64, %63 : vector<1x16xf32>
    %66 = arith.addf %62, %65 : vector<1x16xf32>
    %67 = vector.extract_strided_slice %21 {offsets = [0, 5], sizes = [1, 16], strides = [1, 1]} : vector<1x22xf32> to vector<1x16xf32>
    %68 = vector.broadcast %17 : f32 to vector<1x16xf32>
    %69 = arith.mulf %68, %67 : vector<1x16xf32>
    %70 = arith.addf %66, %69 : vector<1x16xf32>
    %71 = vector.extract_strided_slice %20 {offsets = [0, 6], sizes = [1, 16], strides = [1, 1]} : vector<1x22xf32> to vector<1x16xf32>
    %72 = vector.broadcast %11 : f32 to vector<1x16xf32>
    %73 = arith.mulf %72, %71 : vector<1x16xf32>
    %74 = arith.addf %70, %73 : vector<1x16xf32>
    %75 = vector.extract_strided_slice %21 {offsets = [0, 6], sizes = [1, 16], strides = [1, 1]} : vector<1x22xf32> to vector<1x16xf32>
    %76 = vector.broadcast %18 : f32 to vector<1x16xf32>
    %77 = arith.mulf %76, %75 : vector<1x16xf32>
    %78 = arith.addf %74, %77 : vector<1x16xf32>
    %79 = arith.negf %78 : vector<1x16xf32>
    %80 = math.exp %79 : vector<1x16xf32>
    %cst_7 = arith.constant 1.000000e+00 : f32
    %81 = vector.broadcast %cst_7 : f32 to vector<1x16xf32>
    %82 = arith.addf %81, %80 : vector<1x16xf32>
    %83 = arith.divf %81, %82 : vector<1x16xf32>
    %84 = vector.shape_cast %83 : vector<1x16xf32> to vector<1x1x16xf32>
    %85 = vector.broadcast %84 : vector<1x1x16xf32> to vector<1x4x16xf32>
    %86 = arith.mulf %0, %85 : vector<1x4x16xf32>
    %c0_8 = arith.constant 0 : index
    %c0_9 = arith.constant 0 : index
    %c0_10 = arith.constant 0 : index
    %87 = vector.load %arg3[%c0_8, %c0_9, %c0_10] : memref<1x4x16xf32, #tpu.memory_space<vmem>>, vector<1x4x16xf32>
    tpu.vector_store %arg3[%c0_8, %c0_9, %c0_10], %86 {strides = array<i32>} : memref<1x4x16xf32, #tpu.memory_space<vmem>>, vector<1x4x16xf32>,
    return
  }
  func.func @transform_0(%arg0: i32) -> (i32, i32, i32) {
    %c0_i32 = arith.constant 0 : i32
    %c0_i32_0 = arith.constant 0 : i32
    %c0_i32_1 = arith.constant 0 : i32
    return %arg0, %c0_i32, %c0_i32_0 : i32, i32, i32
  }
  func.func @transform_1(%arg0: i32) -> i32 {
    %c0_i32 = arith.constant 0 : i32
    %c0_i32_0 = arith.constant 0 : i32
    return %c0_i32 : i32
  }
  func.func @transform_2(%arg0: i32) -> (i32, i32, i32) {
    %c0_i32 = arith.constant 0 : i32
    %c0_i32_0 = arith.constant 0 : i32
    %c0_i32_1 = arith.constant 0 : i32
    return %arg0, %c0_i32, %c0_i32_0 : i32, i32, i32
  }
}

</mosaic_0001>

<bundles_post_ra>
// kernel: tpu_custom_call.1
= control target key start
LH: loop header
LB: loop body
LE: loop exit
PB: predicated region body
PF: predicated region fallthrough
CT: control target
= control target key end

     0   :  { %7 = vsyncpa [#allocation3], 0  ;;  %s822_s0 = inlined_call_operand.hbm [shape: f32[2,4,16], index: 0, kind: input, shape index: {}]   ;;  %s823_s1 = inlined_call_operand.hbm [shape: f32[14], index: 1, kind: input, shape index: {}]   ;;  %s824_s2 = inlined_call_operand.hbm [shape: f32[2,4,16], index: 2, kind: output, shape index: {}]  }
   0x1   :  { %9 = vsyncpa [#allocation3 + $0x1], 0 }
   0x2   :  { %10 = vsyncpa [#allocation5], 0 }
   0x3   :  { %11 = vsyncpa [#allocation4], 0 }
   0x4   :  { %13 = vsyncpa [#allocation4 + $0x1], 0  ;;  %s666_s9 = smov 0   ;;  %s668_s10 = smov 0  }
   0x5   :  { %s670_s11 = smov 0   ;;  %s672_s12 = smov 0  }
   0x6 LB: > { %s687_s13 = sadd.s32 4294967295, %s641_s12   ;;  %s430_s14 = sadd.s32 4294967294, %s641_s12   ;;  %s641_s12 = sphi %s672_s12, %s834_s12   ;;  %s637_s11 = sphi %s670_s11, %s833_s11   ;;  %s633_s10 = sphi %s668_s10, %s832_s10   ;;  %s629_s9 = sphi %s666_s9, %s831_s9  }
   0x7   : > { %p39_p0 = scmp.ne.s32.totalorder %s633_s10, %s629_s9  ;;  %p40_p1 = scmp.eq.s32.totalorder %s687_s13, 0 }
   0x8   : > { %p84_p2 = scmp.eq.s32.totalorder %s687_s13, 1  ;;  %p90_p3 = scmp.eq.s32.totalorder %s430_s14, 1 }
   0x9   : > { %p696_p4 = por %p40_p1, %p39_p0  ;;  %p431_p5 = scmp.ge.s32.totalorder %s641_s12, 1 }
   0xa   : > { %p701_p6 = por %p90_p3, %p39_p0  ;;  %p97_p7 = scmp.lt.s32.totalorder %s641_s12, 3 }
   0xb   : > { %s109_s19 = sshll.u32 %s823_s1, 4  ;;  %s717_s21 = sadd.s32 1, %s641_s12   ;;  %s110_s19 = int_to_ptr.hbm [resolvable:$true] %s109_s19 }
   0xc   : > { %p709_p8 = pnand %p431_p5, %p97_p7  ;;  %s23_s22 = ssub.s32 %s641_s12, %s717_s21 }
   0xd   : > { %p24_p12 = scmp.eq.s32.totalorder %s23_s22, 0  ;;  %s26_s23 = sadd.s32 1, %s637_s11 }
   0xe   : > { %p466_p10 = pneg %p709_p8  ;;  %p33_p13 = scmp.ne.s32.totalorder %s637_s11, %s633_s10 }
   0xf   : > { %s643_s24 = smov [#allocation6]   ;;  %p34_p0 = scmp.eq.s32.totalorder %s641_s12, 0 }
  0x10   : > { %p467_p11 = pnand %p466_p10, %p40_p1  ;;  %p732_p3 = por %p84_p2, %p33_p13 }
  0x11   : > { %s727_s25 = scalar_select %p24_p12, %s637_s11, %s26_s23  }
  0x12   : > { %469 = dma.hbm_to_smem (!%p467_p11), %s110_s19, 16, %s643_s24, [#allocation5]  }
  0x13   : > { %s120_s27 = sand.u32 1, %s637_s11   ;;  %p35_p5 = por %p34_p0, %p33_p13 }
  0x14   : > { %p479_p7 = scmp.lt.s32.totalorder %s641_s12, 2  ;;  %s434_s28 = sshll.u32 %s120_s27, 2 }
  0x15   : > { %s435_s29 = sshll.u32 %s641_s12, 2  ;;  %s124_s6 = scalar_lea.vmem [#allocation2], %s434_s28 }
  0x16   : > { %s128_s4 = scalar_lea.hbm %s822_s0, %s435_s29  ;;  %s132_s7 = sshll.u32 %s124_s6, 4  ;;  %s133_s7 = int_to_ptr.vmem [resolvable:$true] %s132_s7 }
  0x17   : > { %s130_s5 = sshll.u32 %s128_s4, 4  ;;  %p742_p10 = pnand %p479_p7, %p35_p5  ;;  %s131_s5 = int_to_ptr.hbm [resolvable:$true] %s130_s5 }
  0x18   : > { %s121_s14 = scalar_lea.sflag [#allocation3], %s120_s27  ;;  %s541_s17 = sshra.s32 %s131_s5, 4  ;;  %s542_s17 = int_to_ptr.hbm [resolvable:$true] %s541_s17 }
  0x19   : > { %s543_s18 = scalar_lea.hbm %s542_s17, 4  ;;  %p545_p11 = pneg %p742_p10 }
  0x1a   : > { %p544_p2 = scmp.ne.s32.totalorder %s542_s17, %s543_s18  ;;  %s548_s23 = scalar_lea.hbm %s822_s0, 8 }
  0x1b   : > { %p549_p0 = scmp.lt.s32.totalorder %s542_s17, %s822_s0  ;;  %p550_p5 = scmp.lt.s32.totalorder %s548_s23, %s543_s18 }
  0x1c   : > { %p546_p12 = pnand %p545_p11, %p544_p2 }
  0x1d   : > { %p551_p7 = por %p550_p5, %p549_p0 }
  0x1e   : > { %p547_p13 = pneg %p546_p12 }
  0x20   : > { %p552_p9 = pnand %p551_p7, %p547_p13 }
  0x22   : > { %555 = shalt.err (!%p552_p9)
}
  0x23   : > { %473 = dma.hbm_to_vmem [thread:$0]  (!%p742_p10), %s131_s5, 64, %s133_s7, %s121_s14  }
  0x24   : > { %141 = sbr.rel (%p709_p8) target bundleno = 374 (0x176), region = 28  ;;  %s759_s27 = sand.u32 (!%p709_p8), 1, %s633_s10  }
  0x25   : > { %s437_s29 = sshll.u32 (!%p709_p8), %s759_s27, 2  ;;  %s144_s30 = scalar_lea.sflag (!%p709_p8), [#allocation3], %s759_s27 }
  0x26   : > { %s147_s3 = scalar_lea.vmem (!%p709_p8), [#allocation2], %s437_s29 }
  0x29   : > { %616 = dma.done.wait (%p696_p4), %s144_s30, 64  }
  0x2a   : > { %618 = vsyncadd (%p696_p4), %s144_s30, 4294967232 }
  0x2b   : > { %620 = dma.done.wait (%p40_p1), [#allocation5], 16  }
  0x2c   : > { %622 = vsyncadd (%p40_p1), [#allocation5], 4294967280 }
  0x2d   : > { %158 = sfence }
  0x2e   : > { %v773_v0 = vld [vmem:[%s147_s3] sm:$0xf]  ;;  %vm176_vm0 = vcmask 125952   ;;  %s644_s15 = smov 3   ;;  %s442_s20 = sld [smem:[#allocation6 + $0x3]]  ;;  %vm210_vm1 = vcmask 23552  }
  0x2f   : > { %v177_v1 = vsel %vm176_vm0, %v773_v0, 0.0  ;;  %v185_v2 = vsel %vm176_vm0, %v773_v0, -inf  ;;  %s450_s4 = sld [smem:[#allocation6 + $0xb]]  ;;  %vm212_vm2 = vcmask 154624   ;;  %s645_s14 = smov 125  }
  0x30   : > { %v178_v3 = vrot.slane %v177_v1, 4  ;;  %v186_v4 = vrot.slane %v185_v2, 4  ;;  %s448_s5 = sld [smem:[#allocation6 + $0x9]]  ;;  %s646_s22 = smov 124  }
  0x31   : > { %s447_s6 = sld [smem:[#allocation6 + $0x8]]  ;;  %s647_s23 = smov 126  }
  0x32   : > { %v179_v5 = vadd.f32 %v178_v3, %v177_v1  ;;  %v187_v6 = vmax.f32 %v185_v2, %v186_v4  ;;  %s192_s7 = sld [smem:[#allocation6]]  ;;  %s648_s24 = smov 127  }
  0x33   : > { %s446_s8 = sld [smem:[#allocation6 + $0x7]]  ;;  %s649_s3 = smov 122  }
  0x34   : > { %v180_v7 = vrot.slane %v179_v5, 2  ;;  %v188_v9 = vrot.slane %v187_v6, 2  ;;  %v254_v17 = vstv %s442_s20  ;;  %s445_s17 = sld [smem:[#allocation6 + $0x6]] }
  0x35   : > { %v275_v22 = vstv %s450_s4  ;;  %s441_s18 = sld [smem:[#allocation6 + $0x2]] }
  0x36   : > { %v181_v8 = vadd.f32 %v180_v7, %v179_v5  ;;  %v189_v12 = vmax.f32 %v187_v6, %v188_v9  ;;  %v247_v23 = vstv %s448_s5  ;;  %s440_s19 = sld [smem:[#allocation6 + $0x1]]  ;;  %s650_s5 = smov 123  }
  0x37   : > { %v233_v24 = vstv %s447_s6  ;;  %s443_s28 = sld [smem:[#allocation6 + $0x4]]  ;;  %s455_s6 = sshll.u32 %s687_s13, 2 }
  0x38   : > { %v182_v10 = vrot.slane %v181_v8, 1  ;;  %v190_v14 = vrot.slane %v189_v12, 1  ;;  %v220_v26 = vstv %s192_s7  ;;  %s449_s30 = sld [smem:[#allocation6 + $0xa]] }
  0x39   : > { %v223_v27 = vstv %s446_s8  ;;  %s444_s20 = sld [smem:[#allocation6 + $0x5]] }
  0x3a   : > { %v183_v11 = vadd.f32 %v182_v10, %v181_v8  ;;  %v191_v15 = vmax.f32 %v189_v12, %v190_v14  ;;  %v296_v35 = vstv %s445_s17  ;;  %s452_s4 = sld [smem:[#allocation6 + $0xd]]  ;;  %s174_s17 = scalar_lea.vmem [#allocation7], %s437_s29 }
  0x3b   : > { %v240_v36 = vstv %s441_s18  ;;  %s345_s18 = sshll.u32 %s174_s17, 4  ;;  %s591_s29 = scalar_lea.hbm %s824_s2, 8  ;;  %s346_s18 = int_to_ptr.vmem [resolvable:$true] %s345_s18 }
  0x3c   : > { %v184_v13 = vmul.f32 0.25, %v183_v11  ;;  %v226_v37 = vstv %s440_s19  ;;  %s333_s19 = scalar_lea.sflag [#allocation4], %s759_s27 }
  0x3d   : > { %v268_v41 = vstv %s443_s28 }
  0x3e   : > { %207 = vrot.lane.b32.xlu0 %v184_v13, %s644_s15  ;;  %v261_v42 = vstv %s449_s30 }
  0x3f   : > { %v282_v46 = vstv %s444_s20 }
  0x40   : > { %v303_v49 = vstv %s452_s4 }
  0x46   : > { %215 = vrot.lane.b32.xlu0 %v191_v15, %s644_s15  ;;  %s451_s15 = sld [smem:[#allocation6 + $0xc]] }
  0x4c   : > { %v289_v45 = vstv %s451_s15 }
  0xb0   : > { %v208_v16 = vpop.permute.xlu0 %207 }
  0xb1   : > { %v211_v18 = vsel %vm210_vm1, 0.0, %v208_v16 }
  0xb2   : > { %v213_v19 = vsel %vm212_vm2, %v211_v18, 0.0 }
  0xb3   : > { %v255_v20 = vmul.f32 %v254_v17, %v213_v19  ;;  %v221_v32 = vmul.f32 %v220_v26, %v213_v19  ;;  %v297_v38 = vmul.f32 %v296_v35, %v213_v19  ;;  %v241_v39 = vmul.f32 %v240_v36, %v213_v19 }
  0xb4   : > { %v227_v40 = vmul.f32 %v226_v37, %v213_v19  ;;  %v269_v43 = vmul.f32 %v268_v41, %v213_v19  ;;  %v283_v48 = vmul.f32 %v282_v46, %v213_v19 }
  0xb5   : > { %257 = vrot.lane.b32.xlu0 %v255_v20, %s645_s14 }
  0xb8   : > { %v216_v21 = vpop.permute.xlu0 %215 }
  0xb9   : > { %v218_v25 = vsel %vm210_vm1, 0.0, %v216_v21 }
  0xba   : > { %v219_v28 = vsel %vm212_vm2, %v218_v25, 0.0 }
  0xbb   : > { %v276_v29 = vmul.f32 %v275_v22, %v219_v28  ;;  %v248_v30 = vmul.f32 %v247_v23, %v219_v28  ;;  %v234_v31 = vmul.f32 %v233_v24, %v219_v28  ;;  %v224_v33 = vmul.f32 %v223_v27, %v219_v28 }
  0xbc   : > { %v262_v44 = vmul.f32 %v261_v42, %v219_v28  ;;  %v290_v47 = vmul.f32 %v289_v45, %v219_v28  ;;  %v304_v50 = vmul.f32 %v303_v49, %v219_v28 }
  0xbd   : > { %278 = vrot.lane.b32.xlu0 %v276_v29, %s646_s22  ;;  %250 = vrot.lane.b32.xlu2 %v248_v30, %s647_s23  ;;  %v225_v34 = vadd.f32 %v224_v33, %v221_v32 }
  0xbe   : > { %236 = vrot.lane.b32.xlu1 %v234_v31, %s648_s24 }
  0xc5   : > { %299 = vrot.lane.b32.xlu0 %v297_v38, %s649_s3  ;;  %243 = vrot.lane.b32.xlu2 %v241_v39, %s647_s23 }
  0xc6   : > { %229 = vrot.lane.b32.xlu1 %v227_v40, %s648_s24 }
  0xcd   : > { %271 = vrot.lane.b32.xlu2 %v269_v43, %s646_s22 }
  0xce   : > { %264 = vrot.lane.b32.xlu1 %v262_v44, %s645_s14  ;;  %s343_s14 = scalar_lea.hbm %s824_s2, %s455_s6 }
  0xcf   : > { %s347_s13 = sshll.u32 %s343_s14, 4  ;;  %s348_s13 = int_to_ptr.hbm [resolvable:$true] %s347_s13 }
  0xd0   : > { %s585_s22 = sshra.s32 %s348_s13, 4  ;;  %s586_s22 = int_to_ptr.hbm [resolvable:$true] %s585_s22 }
  0xd1   : > { %s587_s23 = scalar_lea.hbm %s586_s22, 4  ;;  %p592_p9 = scmp.lt.s32.totalorder %s586_s22, %s824_s2 }
  0xd2   : > { %p588_p1 = scmp.ne.s32.totalorder %s586_s22, %s587_s23  ;;  %p593_p10 = scmp.lt.s32.totalorder %s591_s29, %s587_s23 }
  0xd4   : > { %p589_p4 = pnand %p588_p1, %p732_p3  ;;  %p594_p2 = por %p593_p10, %p592_p9 }
  0xd5   : > { %292 = vrot.lane.b32.xlu2 %v290_v47, %s650_s5 }
  0xd6   : > { %285 = vrot.lane.b32.xlu1 %v283_v48, %s650_s5  ;;  %p590_p8 = pneg %p589_p4 }
  0xd8   : > { %p595_p11 = pnand %p594_p2, %p590_p8 }
  0xde   : > { %306 = vrot.lane.b32.xlu1 %v304_v50, %s649_s3 }
 0x117   : > { %v251_v51 = vpop.permute.xlu2 %250 }
 0x11f   : > { %v244_v53 = vpop.permute.xlu2 %243 }
 0x127   : > { %v258_v56 = vpop.permute.xlu0 %257  ;;  %v272_v60 = vpop.permute.xlu2 %271 }
 0x12f   : > { %v279_v1 = vpop.permute.xlu0 %278  ;;  %v293_v6 = vpop.permute.xlu2 %292 }
 0x130   : > { %v237_v52 = vpop.permute.xlu1 %236 }
 0x137   : > { %v300_v8 = vpop.permute.xlu0 %299 }
 0x138   : > { %v230_v54 = vpop.permute.xlu1 %229 }
 0x139   : > { %v232_v55 = vadd.f32 %v230_v54, %v225_v34 }
 0x13b   : > { %v239_v57 = vadd.f32 %v237_v52, %v232_v55 }
 0x13d   : > { %v246_v58 = vadd.f32 %v244_v53, %v239_v57 }
 0x13f   : > { %v253_v59 = vadd.f32 %v251_v51, %v246_v58 }
 0x140   : > { %v265_v61 = vpop.permute.xlu1 %264 }
 0x141   : > { %v260_v62 = vadd.f32 %v258_v56, %v253_v59 }
 0x143   : > { %v267_v63 = vadd.f32 %v265_v61, %v260_v62 }
 0x145   : > { %v274_v2 = vadd.f32 %v272_v60, %v267_v63 }
 0x147   : > { %v281_v3 = vadd.f32 %v279_v1, %v274_v2 }
 0x148   : > { %v286_v4 = vpop.permute.xlu1 %285 }
 0x149   : > { %v288_v5 = vadd.f32 %v286_v4, %v281_v3 }
 0x14b   : > { %v295_v7 = vadd.f32 %v293_v6, %v288_v5 }
 0x14d   : > { %v302_v9 = vadd.f32 %v300_v8, %v295_v7 }
 0x150   : > { %v307_v10 = vpop.permute.xlu1 %306 }
 0x151   : > { %v309_v11 = vadd.f32 %v307_v10, %v302_v9 }
 0x153   : > { %v453_v12 = vmul.f32 -1.442695, %v309_v11 }
 0x155   : > { %522 = vpow2.f32 %v453_v12 }
 0x15b   : > { %v523_v13 = vpop.eup %522 }
 0x15c   : > { %v313_v14 = vadd.f32 1.0, %v523_v13 }
 0x15e   : > { %524 = vrcp.f32 %v313_v14  ;;  %v325_v18 = vand.u32 2147483648, %v313_v14  ;;  %v323_v20 = vand.u32 2147483647, %v313_v14  ;;  %vm319_vm4 = vweird.f32 %v313_v14 }
 0x160   : > { %v326_v22 = vor.u32 1.1754944e-38, %v325_v18  ;;  %vm324_vm6 = vcmp.eq.f32.partialorder %v323_v20, 8.507059e+37 }
 0x164   : > { %v525_v15 = vpop.eup %524 }
 0x165   : > { %v315_v16 = vmul.f32 %v525_v15, %v313_v14  ;;  %vm320_vm3 = vweird.f32 %v525_v15 }
 0x166   : > { %vm321_vm5 = vmor %vm319_vm4, %vm320_vm3 }
 0x167   : > { %v316_v17 = vsub.f32 1.0, %v315_v16 }
 0x169   : > { %v317_v19 = vmul.f32 %v525_v15, %v316_v17 }
 0x16b   : > { %v318_v21 = vadd.f32 %v525_v15, %v317_v19 }
 0x16d   : > { %v322_v23 = vsel %vm321_vm5, %v525_v15, %v318_v21 }
 0x16e   : > { %v327_v24 = vsel %vm324_vm6, %v326_v22, %v322_v23 }
 0x16f   : > { %v329_v25 = vperm.slane %v327_v24, 0 }
 0x171   : > { %v330_v26 = vmul.f32 %v329_v25, %v773_v0 }
 0x173   : > { %331 = vst.msk [vmem:[%s174_s17] sm:$0xf] %vm176_vm0, %v330_v26 }
 0x174   : > { %598 = shalt.err (!%p595_p11)
}
 0x175   : > { %464 = dma.vmem_to_hbm [thread:$0]  (%p732_p3), %s346_s18, 64, %s348_s13, %s333_s19  }
 0x176 PF: > { %s359_s27 = sand.u32 1, %s629_s9   ;;  %p830_p12 = scmp.ge.s32.totalorder %s641_s12, 2 }
 0x177   : > { %s360_s15 = scalar_lea.sflag [#allocation4], %s359_s27 }
 0x178   : > { %p475_p13 = pnand %p830_p12, %p701_p6 }
 0x17a   : > { %p476_p0 = pneg %p475_p13 }
 0x17c   : > { %624 = dma.done.wait (%p476_p0), %s360_s15, 64  }
 0x17d   : > { %626 = vsyncadd (%p476_p0), %s360_s15, 4294967232  ;;  %p16_p5 = scmp.ge.s32.totalorder %s717_s21, 4   ;;  %s831_s9 = smov %s633_s10 }
 0x17e   : > { %s832_s10 = smov %s637_s11  ;;  %s833_s11 = smov %s727_s25 }
 0x17f   : > { %s834_s12 = smov %s717_s21  ;;  %18 = sbr.rel (!%p16_p5) target bundleno = 6 (0x6), region = 78 }
 0x184   :  { %366 = vsyncpa [#allocation3], 1 }
 0x185   :  { %368 = vsyncpa [#allocation3 + $0x1], 1 }
 0x186   :  { %369 = vsyncpa [#allocation4], 1 }
 0x187   :  { %371 = vsyncpa [#allocation4 + $0x1], 1 }
 0x188   :  { %372 = vsyncpa [#allocation5], 1 }
 0x189   :  { %374 = vsyncpa [#allocation5 + $0x1], 1 }

</bundles_post_ra>
